<compile_context>
chip_gen: v7x
topology: tpu7x:2x2x1
jax: 0.10.0
libtpu: 0.0.40
codegen_flags: <defaults>
</compile_context>

<pallas_src>
import functools

import jax
import jax.numpy as jnp
from jax.experimental import pallas as pl
from jax.experimental.pallas import tpu as pltpu


def _rbf_kernel(x_ref, e_ref, off_ref, o_ref, *, centered: bool):
    # x_ref:   (TM, groups)           packed distances (groups per packed row)
    # e_ref:   (groups, lane_width)   E[g, g*n_rbf_pad + r] = sqrt(0.5)/widths[r]
    # off_ref: (1, lane_width)        sqrt(0.5)/widths * offsets, lane-tiled
    # o_ref:   (TM, lane_width)       lane-dense output tile
    z = jnp.dot(
        x_ref[...],
        e_ref[...],
        preferred_element_type=jnp.float32,
        precision=jax.lax.Precision.HIGHEST,
    )
    if not centered:
        z = z - off_ref[...]
    o_ref[...] = jnp.exp(-(z * z)).astype(o_ref.dtype)


def gaussian_rbf(inputs, offsets, widths, *, centered=False,
                 tile_rows=4096, out_dtype=jnp.float32):
    """Pallas TPU forward of molpot's gaussian_rbf.

    inputs: (...,) distances; offsets/widths: (n_rbf,).
    Returns exp(-0.5 / widths^2 * (inputs[..., None] - offsets)^2),
    shape (..., n_rbf).
    """
    orig_shape = inputs.shape
    n_rbf = int(widths.shape[0])

    widths = widths.astype(jnp.float32).reshape(-1)
    if offsets is None:
        centered = True
        offsets = jnp.zeros((n_rbf,), jnp.float32)
    offsets = offsets.astype(jnp.float32).reshape(-1)

    x_flat = inputs.reshape(-1).astype(jnp.float32)
    n = x_flat.shape[0]

    # Lane packing: pad n_rbf up to a divisor of 128 (<=128) or a multiple of
    # 128 (>128) so the output last dim is always a multiple of 128 lanes.
    if n_rbf <= 128:
        n_rbf_pad = min(128, pl.next_power_of_2(max(1, n_rbf)))
        groups = 128 // n_rbf_pad
    else:
        n_rbf_pad = ((n_rbf + 127) // 128) * 128
        groups = 1
    lane_width = groups * n_rbf_pad

    pad_r = n_rbf_pad - n_rbf
    if pad_r:
        widths = jnp.concatenate([widths, jnp.ones((pad_r,), jnp.float32)])
        offsets = jnp.concatenate([offsets, jnp.zeros((pad_r,), jnp.float32)])

    # Pad flat input to a multiple of `groups` (at most groups-1 extra rows).
    n_pad = (-n) % groups
    if n_pad:
        x_flat = jnp.pad(x_flat, (0, n_pad))
    n_rows = x_flat.shape[0] // groups
    x2d = x_flat.reshape(n_rows, groups)

    # exp(coeff*(x-off)^2) = exp(-(s*x - s*off)^2) with s = sqrt(-coeff).
    # Fold s into the MXU expansion matrix; offsets are pre-scaled by s.
    s = (0.5 ** 0.5) / widths                                   # (n_rbf_pad,)
    eye = jnp.eye(groups, dtype=jnp.float32)
    e_mat = (eye[:, :, None] * s[None, None, :]).reshape(groups, lane_width)
    off_scaled = jnp.tile(s * offsets, groups).reshape(1, lane_width)

    # Tile sizing.
    rows8 = max(8, ((n_rows + 7) // 8) * 8)
    if rows8 <= 2048:
        tm = rows8                       # small input: one (possibly padded) block
    else:
        # Large input: big tiles amortize the ~0.35us per-step overhead, but
        # keep >= 4 grid steps so "parallel" shards across v7x's 2 TensorCores.
        quarter8 = ((pl.cdiv(n_rows, 4) + 7) // 8) * 8
        tm = max(256, min(int(tile_rows), quarter8))
    grid = (pl.cdiv(n_rows, tm),)

    out_itemsize = jnp.dtype(out_dtype).itemsize
    # VMEM budget: the (tm, groups) input block is lane-padded to (tm, 128) in
    # VMEM, so double-buffered in+out ~= 2*(tm*512 + tm*lane_width*itemsize).
    vmem_need = 2 * (tm * 128 * 4 + tm * lane_width * out_itemsize) + (2 << 20)
    cp_kwargs = dict(dimension_semantics=("parallel",))
    if vmem_need > (12 << 20):
        cp_kwargs["vmem_limit_bytes"] = int(min(vmem_need + (4 << 20), 64 << 20))

    cost = pl.CostEstimate(
        flops=3 * n * n_rbf,
        transcendentals=n * n_rbf,
        bytes_accessed=4 * n + n * n_rbf * out_itemsize,
    )

    kernel = functools.partial(_rbf_kernel, centered=bool(centered))

    out = pl.pallas_call(
        kernel,
        out_shape=jax.ShapeDtypeStruct((n_rows, lane_width), out_dtype),
        grid_spec=pltpu.PrefetchScalarGridSpec(
            num_scalar_prefetch=0,
            grid=grid,
            in_specs=[
                pl.BlockSpec((tm, groups), lambda i: (i, 0)),
                pl.BlockSpec((groups, lane_width), lambda i: (0, 0)),
                pl.BlockSpec((1, lane_width), lambda i: (0, 0)),
            ],
            out_specs=pl.BlockSpec((tm, lane_width), lambda i: (i, 0)),
        ),
        compiler_params=pltpu.CompilerParams(**cp_kwargs),
        cost_estimate=cost,
    )(x2d, e_mat, off_scaled)

    # Row-major view back to (rows, n_rbf_pad); slice only if padding was added.
    out = out.reshape(n + n_pad, n_rbf_pad)
    if n_pad or pad_r:
        out = out[:n, :n_rbf]
    return out.reshape(*orig_shape, n_rbf)


def gaussian_rbf_centered(inputs, widths, offsets=None, *, tile_rows=4096,
                          out_dtype=jnp.float32):
    """Forward of GaussianRBFCentered.  offsets=None -> centered fast path
    (skips the offset subtract); pass offsets explicitly if they were trained."""
    return gaussian_rbf(inputs, offsets, widths, centered=(offsets is None),
                        tile_rows=tile_rows, out_dtype=out_dtype)


def make_params(n_rbf: int, cutoff: float, start: float = 1.0):
    # Mirrors GaussianRBFCentered.__init__:
    #   widths = linspace(start, cutoff, n_rbf); offsets = zeros_like(widths)
    # TODO(synk): `trainable=True` (nn.Parameter registration) is a framework
    # concern, not a kernel one; the forward math is identical.
    widths = jnp.linspace(start, cutoff, n_rbf, dtype=jnp.float32)
    offsets = jnp.zeros_like(widths)
    return widths, offsets


def _reference(inputs, widths, offsets):
    coeff = -0.5 / (widths ** 2)
    diff = inputs[..., None] - offsets
    return jnp.exp(coeff * diff ** 2)


if __name__ == "__main__":
    key = jax.random.PRNGKey(0)
    k1, k2 = jax.random.split(key)

    # GaussianRBFCentered(n_rbf=16, cutoff=5.0, start=1.0)
    n_rbf, cutoff, start = 16, 5.0, 1.0
    widths, offsets = make_params(n_rbf, cutoff, start)

    # Small "distances" input: batch=2, pairs=64.
    B, P = 2, 64
    inputs = jax.random.uniform(k1, (B, P), dtype=jnp.float32,
                                minval=0.0, maxval=cutoff)

    out = gaussian_rbf_centered(inputs, widths)          # centered fast path
    out = jax.block_until_ready(out)
    ref = _reference(inputs, widths, offsets)
    assert out.shape == (B, P, n_rbf), out.shape
    assert jnp.allclose(out, ref, atol=1e-5, rtol=1e-4), "centered mismatch"

    # General path: nonzero offsets and n_rbf=20 (does not divide 128 -> padded
    # to 32 lanes per group), plus an element count that exercises row padding.
    n_rbf2 = 20
    widths2 = jnp.linspace(0.5, 3.0, n_rbf2, dtype=jnp.float32)
    offsets2 = jnp.linspace(0.0, cutoff, n_rbf2, dtype=jnp.float32)
    inputs2 = jax.random.uniform(k2, (3, 37), dtype=jnp.float32,
                                 minval=0.0, maxval=cutoff)
    out2 = jax.block_until_ready(gaussian_rbf(inputs2, offsets2, widths2))
    ref2 = _reference(inputs2, widths2, offsets2)
    assert out2.shape == (3, 37, n_rbf2), out2.shape
    assert jnp.allclose(out2, ref2, atol=1e-5, rtol=1e-4), "general mismatch"

    print("KERNEL_OK")
</pallas_src>

<mosaic_0001>
module attributes {stable_mosaic.version = 11 : i64} {
  func.func @_rbf_kernel(%arg0: i32, %arg1: memref<16x8xf32, #tpu.memory_space<vmem>>, %arg2: memref<8x128xf32, #tpu.memory_space<vmem>>, %arg3: memref<1x128xf32, #tpu.memory_space<vmem>>, %arg4: memref<16x128xf32, #tpu.memory_space<vmem>>) attributes {dimension_semantics = [#tpu.dimension_semantics<parallel>], iteration_bounds = array<i64: 1>, scalar_prefetch = 0 : i64, scratch_operands = 0 : i64, tpu.core_type = #tpu.core_type<tc>, window_params = [{transform_indices = @transform_0, window_bounds = array<i64: 16, 8>}, {pipeline_mode = #tpu.pipeline_mode<synchronous>, transform_indices = @transform_1, window_bounds = array<i64: 8, 128>}, {pipeline_mode = #tpu.pipeline_mode<synchronous>, transform_indices = @transform_2, window_bounds = array<i64: 1, 128>}, {transform_indices = @transform_3, window_bounds = array<i64: 16, 128>}]} {
    %c0 = arith.constant 0 : index
    %c0_0 = arith.constant 0 : index
    %0 = vector.load %arg1[%c0, %c0_0] : memref<16x8xf32, #tpu.memory_space<vmem>>, vector<16x8xf32>
    %c0_1 = arith.constant 0 : index
    %c0_2 = arith.constant 0 : index
    %1 = vector.load %arg2[%c0_1, %c0_2] : memref<8x128xf32, #tpu.memory_space<vmem>>, vector<8x128xf32>
    %cst = arith.constant dense<0.000000e+00> : vector<16x128xf32>
    %2 = tpu.matmul %0, %1, %cst {dimension_numbers = #tpu.dot_dimension_numbers<[1], [0], [0], [1], [0, 0, 1, 1], [], []>, precision = #tpu.contract_precision<fp32>} : vector<16x8xf32>, vector<8x128xf32>, vector<16x128xf32> -> vector<16x128xf32>
    %3 = arith.mulf %2, %2 : vector<16x128xf32>
    %cst_3 = arith.constant 0.000000e+00 : f32
    %4 = vector.broadcast %cst_3 : f32 to vector<16x128xf32>
    %5 = arith.subf %4, %3 : vector<16x128xf32>
    %6 = math.exp %5 : vector<16x128xf32>
    %c0_4 = arith.constant 0 : index
    %c0_5 = arith.constant 0 : index
    %7 = vector.load %arg4[%c0_4, %c0_5] : memref<16x128xf32, #tpu.memory_space<vmem>>, vector<16x128xf32>
    tpu.vector_store %arg4[%c0_4, %c0_5], %6 {strides = array<i32>} : memref<16x128xf32, #tpu.memory_space<vmem>>, vector<16x128xf32>,
    return
  }
  func.func @transform_0(%arg0: i32) -> (i32, i32) {
    %c0_i32 = arith.constant 0 : i32
    %c0_i32_0 = arith.constant 0 : i32
    return %arg0, %c0_i32 : i32, i32
  }
  func.func @transform_1(%arg0: i32) -> (i32, i32) {
    %c0_i32 = arith.constant 0 : i32
    %c0_i32_0 = arith.constant 0 : i32
    %c0_i32_1 = arith.constant 0 : i32
    return %c0_i32, %c0_i32_0 : i32, i32
  }
  func.func @transform_2(%arg0: i32) -> (i32, i32) {
    %c0_i32 = arith.constant 0 : i32
    %c0_i32_0 = arith.constant 0 : i32
    %c0_i32_1 = arith.constant 0 : i32
    return %c0_i32, %c0_i32_0 : i32, i32
  }
  func.func @transform_3(%arg0: i32) -> (i32, i32) {
    %c0_i32 = arith.constant 0 : i32
    %c0_i32_0 = arith.constant 0 : i32
    return %arg0, %c0_i32 : i32, i32
  }
}

</mosaic_0001>

<bundles_post_ra>
// kernel: tpu_custom_call.1
= control target key start
LH: loop header
LB: loop body
LE: loop exit
PB: predicated region body
PF: predicated region fallthrough
CT: control target
= control target key end

     0   :  { %vm18_vm0 = vcmask 64512   ;;  %s673_s0 = inlined_call_operand.vmem [shape: f32[16,8], index: 0, kind: input, shape index: {}]   ;;  %s674_s1 = inlined_call_operand.vmem [shape: f32[8,128], index: 1, kind: input, shape index: {}]   ;;  %s675_s2 = inlined_call_operand.vmem [shape: f32[1,128], index: 2, kind: input, shape index: {}]   ;;  %s676_s3 = inlined_call_operand.hbm [shape: f32[16,128], index: 3, kind: output, shape index: {}]  }
   0x1   :  { %v17_v0 = vld [vmem:[%s674_s1] sm:$0xff]  ;;  %v16_v2 = vld [vmem:[%s673_s0 + $0x8] sm:$0xff] }
   0x2   :  { %v15_v1 = vld [vmem:[%s673_s0] sm:$0xff]  ;;  %v26_v3 = vand.u32 4294901760, %v17_v0  ;;  %v23_v5 = vsel %vm18_vm0, %v16_v2, 0 }
   0x3   :  { %v20_v4 = vsel %vm18_vm0, %v15_v1, 0 }
   0x4   :  { %8 = vsyncpa [#allocation3], 0  ;;  %v91_v6 = vand.u32 4294901760, %v20_v4  ;;  %v101_v7 = vand.u32 4294901760, %v23_v5  ;;  %573 = vmatprep.subr.mxu0 %v26_v3  ;;  %558 = vmatprep.subr.mxu1 %v26_v3  ;;  %v113_v8 = vsub.f32 %v17_v0, %v26_v3  ;;  %s629_s0 = smov [#allocation2]  }
   0x5   :  { %574 = vmatpush3.msra.mxu0 %v26_v3  ;;  %559 = vmatpush3.msra.mxu1 %v26_v3  ;;  %s529_s1 = sshll.u32 %s629_s0, 4  ;;  %s530_s1 = int_to_ptr.vmem [resolvable:$true] %s529_s1 }
   0x6   :  { %v92_v9 = vsub.f32 %v20_v4, %v91_v6  ;;  %v102_v10 = vsub.f32 %v23_v5, %v101_v7  ;;  %v114_v11 = vand.u32 4294901760, %v113_v8  ;;  %s605_s2 = scalar_lea.vmem %s530_s1, 256  ;;  %p610_p1 = scmp.lt.s32.totalorder %s530_s1, %s530_s1 }
   0x7   :  { %p606_p0 = scmp.ne.s32.totalorder %s530_s1, %s605_s2  ;;  %p611_p2 = scmp.lt.s32.totalorder %s605_s2, %s605_s2 }
   0x8   :  { %v93_v12 = vand.u32 4294901760, %v92_v9  ;;  %v103_v13 = vand.u32 4294901760, %v102_v10  ;;  %v115_v14 = vsub.f32 %v113_v8, %v114_v11  ;;  %578 = vmatprep.subr.mxu0 %v114_v11 }
   0x9   :  { %p612_p3 = por %p611_p2, %p610_p1 }
   0xa   :  { %575 = vmatprep.mubr.f32.mxu0 %v93_v12  ;;  %v94_v15 = vsub.f32 %v92_v9, %v93_v12  ;;  %v104_v16 = vsub.f32 %v102_v10, %v103_v13  ;;  %v116_v17 = vand.u32 4294901760, %v115_v14 }
   0xb   :  { %576 = vmatmul.mubr.f32.vlgmr.msra.gmra.mrb[0].mxu0 %v103_v13  ;;  %p613_p4 = pnand %p612_p3, %p606_p0 }
   0xc   :  { %v95_v18 = vand.u32 4294901760, %v94_v15  ;;  %v105_v19 = vand.u32 4294901760, %v104_v16  ;;  %579 = vmatpush3.msra.mxu0 %v114_v11  ;;  %580 = vmatprep.mubr.f32.mxu0 %v91_v6 }
   0xd   :  { %563 = vmatprep.subr.mxu1 %v116_v17  ;;  %583 = vmatprep.subr.mxu0 %v26_v3 }
   0xe   :  { %560 = vmatprep.mubr.f32.mxu1 %v95_v18 }
   0xf   :  { %561 = vmatmul.mubr.f32.vlgmr.msra.gmra.mrb[0].mxu1 %v105_v19 }
  0x10   :  { %564 = vmatpush3.msra.mxu1 %v116_v17  ;;  %565 = vmatprep.mubr.f32.mxu1 %v91_v6 }
  0x11   :  { %568 = vmatprep.subr.mxu1 %v113_v8 }
  0x13   :  { %581 = vmatmul.mubr.f32.vlgmr.msra.gmra.mrb[0].mxu0 %v101_v7 }
  0x14   :  { %584 = vmatpush3.msra.mxu0 %v26_v3  ;;  %585 = vmatprep.mubr.f32.mxu0 %v91_v6 }
  0x17   :  { %566 = vmatmul.mubr.f32.vlgmr.msra.gmra.mrb[0].mxu1 %v101_v7 }
  0x18   :  { %569 = vmatpush3.msra.mxu1 %v113_v8  ;;  %570 = vmatprep.mubr.f32.mxu1 %v92_v9 }
  0x1b   :  { %586 = vmatmul.mubr.f32.vlgmr.msra.gmra.mrb[0].mxu0 %v101_v7 }
  0x1f   :  { %571 = vmatmul.mubr.f32.vlgmr.msra.gmra.mrb[0].mxu1 %v102_v10 }
  0xee   :  { %v587_v20 = vpop.f32.mrb[0].mxu0 }
  0xef   :  { %v504_v21 = vpop.f32.mrb[1].mxu0 }
  0xf2   :  { %v572_v22 = vpop.f32.mrb[0].mxu1 }
  0xf3   :  { %v588_v23 = vadd.f32 %v587_v20, %v572_v22  ;;  %v263_v24 = vpop.f32.mrb[1].mxu1 }
  0xf4   :  { %v589_v25 = vadd.f32 %v504_v21, %v263_v24 }
  0xf5   :  { %v515_v26 = vmul.f32 %v588_v23, %v588_v23 }
  0xf6   :  { %v514_v27 = vmul.f32 %v589_v25, %v589_v25 }
  0xf7   :  { %v517_v28 = vsub.f32 0.0, %v515_v26 }
  0xf8   :  { %v516_v29 = vsub.f32 0.0, %v514_v27 }
  0xf9   :  { %v520_v30 = vmul.f32 1.442695, %v517_v28 }
  0xfa   :  { %v518_v31 = vmul.f32 1.442695, %v516_v29 }
  0xfb   :  { %601 = vpow2.f32 %v520_v30 }
  0xfc   :  { %603 = vpow2.f32 %v518_v31 }
 0x105   :  { %v602_v32 = vpop.eup %601 }
 0x106   :  { %v604_v33 = vpop.eup %603  ;;  %523 = vst [vmem:[#allocation2 + $0x8] sm:$0xff] %v602_v32 }
 0x107   :  { %522 = vst [vmem:[#allocation2] sm:$0xff] %v604_v33 }
 0x108   :  { %616 = shalt.err (!%p613_p4)
}
 0x109   :  { %s617_s20 = scalar_lea.hbm %s676_s3, 256 }
 0x10a   :  { %p618_p5 = scmp.ne.s32.totalorder %s676_s3, %s617_s20  ;;  %p621_p6 = scmp.lt.u32.totalorder %s617_s20, %s676_s3 }
 0x10c   :  { %p623_p7 = pnand %p621_p6, %p618_p5 }
 0x10e   :  { %626 = shalt.err (!%p623_p7)
}
 0x10f   :  { %s630_s25 = smov 128   ;;  %s631_s26 = smov 8  }
 0x110   :  { %535 = dma.vmem_to_hbm [thread:$0]  %s530_s1, 256, %s676_s3, [#allocation3], %s630_s25, %s630_s25, %s631_s26  }
 0x111   :  { %627 = dma.done.wait [#allocation3], 256  }
 0x112   :  { %628 = vsyncadd [#allocation3], 4294967040 }
 0x113   :  { %539 = vsyncpa [#allocation3], 1 }

</bundles_post_ra>
